<compile_context>
chip_gen: v7x
topology: tpu7x:2x2x1
jax: 0.10.0
libtpu: 0.0.40
codegen_flags: <defaults>
</compile_context>

<pallas_src>
import jax
import jax.numpy as jnp
from jax.experimental import pallas as pl
from jax.experimental.pallas import tpu as pltpu


# Conservative, v7x-safe tile budget: 2 double-buffered input tiles + 2 output
# tiles must fit under this; the scoped VMEM limit is raised slightly above it.
_VMEM_TILE_BUDGET = 40 * 1024 * 1024
_VMEM_LIMIT_BYTES = 48 * 1024 * 1024


def se_kernel(x_ref, w1t_ref, b1_ref, w2t_ref, b2_ref, o_ref):
    # x_ref block: (Bt, C, HW); HW on the lane axis.
    hw = x_ref.shape[-1]

    # --- squeeze: global average pool over HW -> (Bt, C). C lands on lanes,
    #     exactly the layout the FC matmuls want; the cross-lane reduce runs on
    #     the XLU and is free filler for this HBM-bound kernel. ---
    pooled = jnp.sum(x_ref[...].astype(jnp.float32), axis=-1) * (1.0 / hw)

    # --- excitation (f32 on the MXU): FC1 -> ReLU -> FC2 -> Sigmoid ---
    h = jnp.dot(pooled, w1t_ref[...], preferred_element_type=jnp.float32)
    h = jnp.maximum(h + b1_ref[...], 0.0)                         # (Bt, Cr)
    s = jnp.dot(h, w2t_ref[...], preferred_element_type=jnp.float32)
    s = jax.nn.sigmoid(s + b2_ref[...])                           # (Bt, C)

    # --- scale: broadcast the per-(b, c) gate over HW. Re-read x_ref here so
    #     the whole input tile is not held live in vregs across the body. ---
    gate = s[:, :, None].astype(o_ref.dtype)                      # (Bt, C, 1)
    o_ref[...] = x_ref[...] * gate


def _pick_batch_tile(B, C, HW, itemsize):
    """Largest Bt that (a) keeps 4 tiles under the VMEM budget, (b) leaves
    >= 2 grid steps when B > 1 (v7x megacore), and (c) divides B."""
    per_sample = C * HW * itemsize
    cap = max(1, _VMEM_TILE_BUDGET // (4 * per_sample))
    bt = min(B, cap)
    if B > 1:
        bt = min(bt, max(1, B // 2))
    while B % bt != 0:          # full blocks only -> no masked boundary stores
        bt -= 1
    return bt


def se_layer(x, w1, b1, w2, b2, *, bt=None):
    """x: (B, C, H, W). w1: (Cr, C), b1: (Cr,), w2: (C, Cr), b2: (C,)."""
    B, C, H, W = x.shape
    Cr = w1.shape[0]
    HW = H * W
    # TODO(synk): for SE blocks with HW < 128 the output store is lane-masked;
    # a (B, HW, C) layout with C on the lane axis would be denser there.

    x_flat = x.reshape(B, C, HW)
    # Tiny host-side glue on the (C, Cr)-sized weights only.
    w1t = w1.T.astype(jnp.float32)                 # (C, Cr)
    w2t = w2.T.astype(jnp.float32)                 # (Cr, C)
    b1r = b1.reshape(1, Cr).astype(jnp.float32)
    b2r = b2.reshape(1, C).astype(jnp.float32)

    if bt is None:
        bt = _pick_batch_tile(B, C, HW, jnp.dtype(x.dtype).itemsize)
    grid = (B // bt,)

    out = pl.pallas_call(
        se_kernel,
        out_shape=jax.ShapeDtypeStruct((B, C, HW), x.dtype),
        grid_spec=pltpu.PrefetchScalarGridSpec(
            num_scalar_prefetch=0,
            grid=grid,
            in_specs=[
                pl.BlockSpec((bt, C, HW), lambda i: (i, 0, 0)),
                pl.BlockSpec((C, Cr), lambda i: (0, 0)),
                pl.BlockSpec((1, Cr), lambda i: (0, 0)),
                pl.BlockSpec((Cr, C), lambda i: (0, 0)),
                pl.BlockSpec((1, C), lambda i: (0, 0)),
            ],
            out_specs=pl.BlockSpec((bt, C, HW), lambda i: (i, 0, 0)),
        ),
        compiler_params=pltpu.CompilerParams(
            dimension_semantics=("parallel",),
            vmem_limit_bytes=_VMEM_LIMIT_BYTES,
        ),
    )(x_flat, w1t, b1r, w2t, b2r)

    return out.reshape(B, C, H, W)


def se_layer_ref(x, w1, b1, w2, b2):
    """Pure-JAX reference mirroring the PyTorch forward."""
    y = jnp.mean(x, axis=(2, 3))                       # (B, C)
    y = jnp.maximum(y @ w1.T + b1, 0.0)                # (B, Cr)
    y = jax.nn.sigmoid(y @ w2.T + b2)                  # (B, C)
    return x * y[:, :, None, None]


if __name__ == "__main__":
    # Shapes consistent with SELayer(channel=32, reduction=16):
    B, C, H, W = 4, 32, 16, 16
    reduction = 16
    Cr = C // reduction

    key = jax.random.PRNGKey(0)
    kx, k1, k2, k3, k4 = jax.random.split(key, 5)

    x = jax.random.normal(kx, (B, C, H, W), dtype=jnp.float32)

    # nn.Linear weight shapes: (out_features, in_features).
    bound1 = 1.0 / (C ** 0.5)
    w1 = jax.random.uniform(k1, (Cr, C), minval=-bound1, maxval=bound1, dtype=jnp.float32)
    b1 = jax.random.uniform(k2, (Cr,), minval=-bound1, maxval=bound1, dtype=jnp.float32)
    bound2 = 1.0 / (Cr ** 0.5)
    w2 = jax.random.uniform(k3, (C, Cr), minval=-bound2, maxval=bound2, dtype=jnp.float32)
    b2 = jax.random.uniform(k4, (C,), minval=-bound2, maxval=bound2, dtype=jnp.float32)

    out = se_layer(x, w1, b1, w2, b2)
    out = jax.block_until_ready(out)

    ref = se_layer_ref(x, w1, b1, w2, b2)
    assert out.shape == (B, C, H, W)
    assert jnp.allclose(out, ref, atol=1e-5, rtol=1e-5), "mismatch vs reference"

    print("KERNEL_OK")
</pallas_src>

<mosaic_0001>
module attributes {stable_mosaic.version = 11 : i64} {
  func.func @se_kernel(%arg0: i32, %arg1: memref<2x32x256xf32, #tpu.memory_space<vmem>>, %arg2: memref<32x2xf32, #tpu.memory_space<vmem>>, %arg3: memref<1x2xf32, #tpu.memory_space<vmem>>, %arg4: memref<2x32xf32, #tpu.memory_space<vmem>>, %arg5: memref<1x32xf32, #tpu.memory_space<vmem>>, %arg6: memref<2x32x256xf32, #tpu.memory_space<vmem>>) attributes {dimension_semantics = [#tpu.dimension_semantics<parallel>], iteration_bounds = array<i64: 2>, scalar_prefetch = 0 : i64, scratch_operands = 0 : i64, tpu.core_type = #tpu.core_type<tc>, window_params = [{transform_indices = @transform_0, window_bounds = array<i64: 2, 32, 256>}, {pipeline_mode = #tpu.pipeline_mode<synchronous>, transform_indices = @transform_1, window_bounds = array<i64: 32, 2>}, {pipeline_mode = #tpu.pipeline_mode<synchronous>, transform_indices = @transform_2, window_bounds = array<i64: 1, 2>}, {pipeline_mode = #tpu.pipeline_mode<synchronous>, transform_indices = @transform_3, window_bounds = array<i64: 2, 32>}, {pipeline_mode = #tpu.pipeline_mode<synchronous>, transform_indices = @transform_4, window_bounds = array<i64: 1, 32>}, {transform_indices = @transform_5, window_bounds = array<i64: 2, 32, 256>}]} {
    %c0 = arith.constant 0 : index
    %c0_0 = arith.constant 0 : index
    %c0_1 = arith.constant 0 : index
    %0 = vector.load %arg1[%c0, %c0_0, %c0_1] : memref<2x32x256xf32, #tpu.memory_space<vmem>>, vector<2x32x256xf32>
    %cst = arith.constant dense<0.000000e+00> : vector<2x32xf32>
    %1 = vector.multi_reduction <add>, %0, %cst [2] : vector<2x32x256xf32> to vector<2x32xf32>
    %cst_2 = arith.constant 3.906250e-03 : f32
    %2 = vector.broadcast %cst_2 : f32 to vector<2x32xf32>
    %3 = arith.mulf %1, %2 : vector<2x32xf32>
    %c0_3 = arith.constant 0 : index
    %c0_4 = arith.constant 0 : index
    %4 = vector.load %arg2[%c0_3, %c0_4] : memref<32x2xf32, #tpu.memory_space<vmem>>, vector<32x2xf32>
    %cst_5 = arith.constant dense<0.000000e+00> : vector<2x2xf32>
    %5 = tpu.matmul %3, %4, %cst_5 {dimension_numbers = #tpu.dot_dimension_numbers<[1], [0], [0], [1], [0, 0, 1, 1], [], []>} : vector<2x32xf32>, vector<32x2xf32>, vector<2x2xf32> -> vector<2x2xf32>
    %c0_6 = arith.constant 0 : index
    %c0_7 = arith.constant 0 : index
    %6 = vector.load %arg3[%c0_6, %c0_7] : memref<1x2xf32, #tpu.memory_space<vmem>>, vector<1x2xf32>
    %7 = vector.broadcast %6 : vector<1x2xf32> to vector<2x2xf32>
    %8 = arith.addf %5, %7 : vector<2x2xf32>
    %cst_8 = arith.constant 0.000000e+00 : f32
    %9 = vector.broadcast %cst_8 : f32 to vector<2x2xf32>
    %10 = arith.maximumf %8, %9 : vector<2x2xf32>
    %c0_9 = arith.constant 0 : index
    %c0_10 = arith.constant 0 : index
    %11 = vector.load %arg4[%c0_9, %c0_10] : memref<2x32xf32, #tpu.memory_space<vmem>>, vector<2x32xf32>
    %cst_11 = arith.constant dense<0.000000e+00> : vector<2x32xf32>
    %12 = tpu.matmul %10, %11, %cst_11 {dimension_numbers = #tpu.dot_dimension_numbers<[1], [0], [0], [1], [0, 0, 1, 1], [], []>} : vector<2x2xf32>, vector<2x32xf32>, vector<2x32xf32> -> vector<2x32xf32>
    %c0_12 = arith.constant 0 : index
    %c0_13 = arith.constant 0 : index
    %13 = vector.load %arg5[%c0_12, %c0_13] : memref<1x32xf32, #tpu.memory_space<vmem>>, vector<1x32xf32>
    %14 = vector.broadcast %13 : vector<1x32xf32> to vector<2x32xf32>
    %15 = arith.addf %12, %14 : vector<2x32xf32>
    %16 = arith.negf %15 : vector<2x32xf32>
    %17 = math.exp %16 : vector<2x32xf32>
    %cst_14 = arith.constant 1.000000e+00 : f32
    %18 = vector.broadcast %cst_14 : f32 to vector<2x32xf32>
    %19 = arith.addf %18, %17 : vector<2x32xf32>
    %20 = arith.divf %18, %19 : vector<2x32xf32>
    %21 = vector.shape_cast %20 : vector<2x32xf32> to vector<2x32x1xf32>
    %c0_15 = arith.constant 0 : index
    %c0_16 = arith.constant 0 : index
    %c0_17 = arith.constant 0 : index
    %22 = vector.load %arg1[%c0_15, %c0_16, %c0_17] : memref<2x32x256xf32, #tpu.memory_space<vmem>>, vector<2x32x256xf32>
    %23 = vector.broadcast %21 : vector<2x32x1xf32> to vector<2x32x256xf32>
    %24 = arith.mulf %22, %23 : vector<2x32x256xf32>
    %c0_18 = arith.constant 0 : index
    %c0_19 = arith.constant 0 : index
    %c0_20 = arith.constant 0 : index
    %25 = vector.load %arg6[%c0_18, %c0_19, %c0_20] : memref<2x32x256xf32, #tpu.memory_space<vmem>>, vector<2x32x256xf32>
    tpu.vector_store %arg6[%c0_18, %c0_19, %c0_20], %24 {strides = array<i32>} : memref<2x32x256xf32, #tpu.memory_space<vmem>>, vector<2x32x256xf32>,
    return
  }
  func.func @transform_0(%arg0: i32) -> (i32, i32, i32) {
    %c0_i32 = arith.constant 0 : i32
    %c0_i32_0 = arith.constant 0 : i32
    %c0_i32_1 = arith.constant 0 : i32
    return %arg0, %c0_i32, %c0_i32_0 : i32, i32, i32
  }
  func.func @transform_1(%arg0: i32) -> (i32, i32) {
    %c0_i32 = arith.constant 0 : i32
    %c0_i32_0 = arith.constant 0 : i32
    %c0_i32_1 = arith.constant 0 : i32
    return %c0_i32, %c0_i32_0 : i32, i32
  }
  func.func @transform_2(%arg0: i32) -> (i32, i32) {
    %c0_i32 = arith.constant 0 : i32
    %c0_i32_0 = arith.constant 0 : i32
    %c0_i32_1 = arith.constant 0 : i32
    return %c0_i32, %c0_i32_0 : i32, i32
  }
  func.func @transform_3(%arg0: i32) -> (i32, i32) {
    %c0_i32 = arith.constant 0 : i32
    %c0_i32_0 = arith.constant 0 : i32
    %c0_i32_1 = arith.constant 0 : i32
    return %c0_i32, %c0_i32_0 : i32, i32
  }
  func.func @transform_4(%arg0: i32) -> (i32, i32) {
    %c0_i32 = arith.constant 0 : i32
    %c0_i32_0 = arith.constant 0 : i32
    %c0_i32_1 = arith.constant 0 : i32
    return %c0_i32, %c0_i32_0 : i32, i32
  }
  func.func @transform_5(%arg0: i32) -> (i32, i32, i32) {
    %c0_i32 = arith.constant 0 : i32
    %c0_i32_0 = arith.constant 0 : i32
    %c0_i32_1 = arith.constant 0 : i32
    return %arg0, %c0_i32, %c0_i32_0 : i32, i32, i32
  }
}

</mosaic_0001>

<bundles_post_ra>
// kernel: tpu_custom_call.1
= control target key start
LH: loop header
LB: loop body
LE: loop exit
PB: predicated region body
PF: predicated region fallthrough
CT: control target
= control target key end

     0   :  { %10 = vsyncpa [#allocation3], 0  ;;  %s1212_s0 = inlined_call_operand.hbm [shape: f32[4,32,256], index: 0, kind: input, shape index: {}]   ;;  %s1213_s1 = inlined_call_operand.vmem [shape: f32[32,2], index: 1, kind: input, shape index: {}]   ;;  %s1214_s2 = inlined_call_operand.vmem [shape: f32[1,2], index: 2, kind: input, shape index: {}]   ;;  %s1215_s3 = inlined_call_operand.vmem [shape: f32[2,32], index: 3, kind: input, shape index: {}]   ;;  %s1216_s4 = inlined_call_operand.vmem [shape: f32[1,32], index: 4, kind: input, shape index: {}]   ;;  %s1217_s5 = inlined_call_operand.hbm [shape: f32[4,32,256], index: 5, kind: output, shape index: {}]  }
   0x1   :  { %12 = vsyncpa [#allocation3 + $0x1], 0 }
   0x2   :  { %13 = vsyncpa [#allocation4], 0 }
   0x3   :  { %15 = vsyncpa [#allocation4 + $0x1], 0  ;;  %s934_s18 = smov 0   ;;  %s936_s19 = smov 0  }
   0x4   :  { %s938_s20 = smov 0   ;;  %s940_s21 = smov 0  }
   0x5 LB: > { %s955_s22 = sadd.s32 4294967295, %s893_s21   ;;  %s685_s23 = sadd.s32 4294967294, %s893_s21   ;;  %s893_s21 = sphi %s940_s21, %s1230_s21   ;;  %s889_s20 = sphi %s938_s20, %s1229_s20   ;;  %s885_s19 = sphi %s936_s19, %s1228_s19   ;;  %s881_s18 = sphi %s934_s18, %s1227_s18  }
   0x6   : > { %s959_s24 = sadd.s32 1, %s893_s21   ;;  %s28_s25 = sadd.s32 1, %s889_s20 }
   0x7   : > { %s25_s26 = ssub.s32 %s893_s21, %s959_s24  ;;  %p35_p0 = scmp.ne.s32.totalorder %s889_s20, %s885_s19 }
   0x8   : > { %p26_p1 = scmp.eq.s32.totalorder %s25_s26, 0  ;;  %p36_p2 = scmp.eq.s32.totalorder %s893_s21, 0 }
   0x9   : > { %p41_p3 = scmp.ne.s32.totalorder %s885_s19, %s881_s18  ;;  %p42_p4 = scmp.eq.s32.totalorder %s955_s22, 0 }
   0xa   : > { %s971_s27 = scalar_select %p26_p1, %s889_s20, %s28_s25  }
   0xb   : > { %p973_p5 = por %p36_p2, %p35_p0  ;;  %p977_p6 = por %p42_p4, %p41_p3 }
   0xc   : > { %p149_p7 = scmp.eq.s32.totalorder %s955_s22, 1  ;;  %p155_p8 = scmp.eq.s32.totalorder %s685_s23, 1 }
   0xd   : > { %p752_p10 = scmp.lt.s32.totalorder %s893_s21, 2  ;;  %s187_s7 = sand.u32 1, %s889_s20  }
   0xe   : > { %p984_p11 = por %p149_p7, %p35_p0  ;;  %p988_p12 = por %p155_p8, %p41_p3 }
   0xf   : > { %s708_s8 = sshll.u32 %s893_s21, 11  ;;  %s688_s9 = sshll.u32 %s187_s7, 7 }
  0x10   : > { %s1221_s30 = scalar_select %p984_p11, 1, 0 }
  0x11   : > { %s1222_s6 = scalar_select %p988_p12, 1, 0 }
  0x12   : > { %s997_s12 = scalar_lea.hbm %s1212_s0, %s708_s8  ;;  %s191_s13 = scalar_lea.vmem [#allocation2], %s688_s9 }
  0x13   : > { %s199_s14 = sshll.u32 %s191_s13, 4  ;;  %p1001_p13 = pnand %p752_p10, %p973_p5  ;;  %s1005_s14 = int_to_ptr.vmem [resolvable:$true] %s199_s14 }
  0x14   : > { %s1007_s16 = scalar_lea.sflag [#allocation3], %s187_s7  ;;  %s797_s17 = scalar_lea.hbm %s997_s12, 2048 }
  0x15   : > { %p798_p0 = scmp.ne.s32.totalorder %s997_s12, %s797_s17  ;;  %p799_p1 = pneg %p1001_p13 }
  0x16   : > { %s802_s26 = scalar_lea.hbm %s1212_s0, 4096  ;;  %p803_p4 = scmp.lt.u32.totalorder %s997_s12, %s1212_s0 }
  0x17   : > { %p800_p2 = pnand %p799_p1, %p798_p0  ;;  %p804_p5 = scmp.lt.u32.totalorder %s802_s26, %s797_s17 }
  0x18   : > { %p806_p8 = scmp.lt.u32.totalorder %s797_s17, %s997_s12 }
  0x19   : > { %p801_p3 = pneg %p800_p2  ;;  %p805_p7 = por %p804_p5, %p803_p4 }
  0x1b   : > { %p807_p10 = por %p806_p8, %p805_p7 }
  0x1d   : > { %p808_p9 = pnand %p807_p10, %p801_p3 }
  0x1f   : > { %811 = shalt.err (!%p808_p9)
}
  0x20   : > { %s812_s7 = scalar_lea.vmem %s1005_s14, 2048  ;;  %s895_s9 = smov [#allocation2]  }
  0x21   : > { %p813_p0 = scmp.ne.s32.totalorder %s1005_s14, %s812_s7  ;;  %s817_s10 = sshll.u32 %s895_s9, 4  ;;  %s818_s10 = int_to_ptr.vmem [resolvable:$false] %s817_s10 }
  0x22   : > { %s819_s11 = scalar_lea.vmem %s818_s10, 4096  ;;  %p820_p11 = scmp.lt.s32.totalorder %s1005_s14, %s818_s10 }
  0x23   : > { %p815_p2 = pnand %p813_p0, %p799_p1  ;;  %p821_p4 = scmp.lt.s32.totalorder %s819_s11, %s812_s7 }
  0x25   : > { %p816_p12 = pneg %p815_p2  ;;  %p822_p5 = por %p821_p4, %p820_p11 }
  0x27   : > { %p823_p7 = pnand %p822_p5, %p816_p12 }
  0x29   : > { %826 = shalt.err (!%p823_p7)
}
  0x2a   : > { %s896_s13 = smov 256   ;;  %s897_s17 = smov 16  }
  0x2b   : > { %747 = dma.hbm_to_vmem [thread:$0]  (!%p1001_p13), %s997_s12, 2048, %s1005_s14, %s1007_s16, %s896_s13, %s896_s13, %s897_s17  }
  0x2c   : > { %p692_p9 = scmp.ge.s32.totalorder %s893_s21, 1  ;;  %p207_p1 = scmp.lt.s32.totalorder %s893_s21, 3 }
  0x2e   : > { %p208_p3 = pnand %p692_p9, %p207_p1 }
  0x2f   : > { %s1038_s23 = sand.u32 (!%p208_p3), 1, %s885_s19  }
  0x30   : > { %211 = sbr.rel (%p208_p3) target bundleno = 826 (0x33a), region = 40  ;;  %s693_s25 = sshll.u32 (!%p208_p3), %s1038_s23, 7 }
  0x31   : > { %s214_s26 = scalar_lea.sflag (!%p208_p3), [#allocation3], %s1038_s23  ;;  %s217_s28 = scalar_lea.vmem (!%p208_p3), [#allocation2], %s693_s25 }
  0x37   : > { %872 = dma.done.wait (%p977_p6), %s214_s26, 2048  }
  0x38   : > { %874 = vsyncadd (%p977_p6), %s214_s26, 4294965248  ;;  %v1048_v0 = vld [vmem:[%s217_s28 + $0x40] sm:$0xff]  ;;  %v1050_v1 = vld [vmem:[%s217_s28 + $0x48] sm:$0xff]  ;;  %v898_v27 = vmov 0.0|0.0   ;;  %vm899_vm0 = vmmov 0   ;;  %v900_v31 = vmov 0.0   ;;  %v313_v32 = vlaneseq }
  0x39   : > { %v1052_v2 = vld [vmem:[%s217_s28] sm:$0xff]  ;;  %v274_v3 = vadd.f32 %v1050_v1, %v1048_v0  ;;  %v1056_v4 = vld [vmem:[%s217_s28 + $0x8] sm:$0xff]  ;;  %v1058_v5 = vld [vmem:[%s217_s28 + $0x50] sm:$0xff]  ;;  %734 = vmatprep.subr.bf16.mxu0 %v898_v27  ;;  %726 = vmatprep.mubr.msk.f32.mxu0 %vm899_vm0, %v900_v31  ;;  %vm324_vm1 = vcmask 130112   ;;  %vm331_vm2 = vcmask 195712   ;;  %vm338_vm3 = vcmask 261312  }
  0x3a   : > { %v1060_v6 = vld [vmem:[%s217_s28 + $0x58] sm:$0xff]  ;;  %v262_v7 = vadd.f32 %v1056_v4, %v1052_v2  ;;  %v1064_v8 = vld [vmem:[%s217_s28 + $0x10] sm:$0xff]  ;;  %v1072_v12 = vld [vmem:[%s217_s28 + $0x60] sm:$0xff]  ;;  %729 = vmatprep.subr.mxu1 %v900_v31  ;;  %731 = vmatprep.mubr.msk.f32.mxu1 %vm899_vm0, %v900_v31  ;;  %v314_v34 = vand.u32 127, %v313_v32  ;;  %v1108_v39 = vshrl.u32 %v313_v32, 7  ;;  %vm359_vm4 = vcmask 1041409  }
  0x3b   : > { %v1066_v9 = vld [vmem:[%s217_s28 + $0x18] sm:$0xff]  ;;  %275 = vadd.xlane.f32.xlu1 %v274_v3  ;;  %v277_v10 = vadd.f32 %v1060_v6, %v1058_v5  ;;  %v1074_v13 = vld [vmem:[%s217_s28 + $0x68] sm:$0xff]  ;;  %v1076_v14 = vld [vmem:[%s217_s28 + $0x20] sm:$0xff]  ;;  %vm361_vm5 = vcmask 261120   ;;  %vm447_vm6 = vcmask 1041408   ;;  %vm443_vm7 = vcmask 15360  }
  0x3c   : > { %263 = vadd.xlane.f32.xlu0 %v262_v7  ;;  %v265_v11 = vadd.f32 %v1066_v9, %v1064_v8  ;;  %v1078_v15 = vld [vmem:[%s217_s28 + $0x28] sm:$0xff]  ;;  %v280_v16 = vadd.f32 %v1074_v13, %v1072_v12  ;;  %v1084_v18 = vld [vmem:[%s217_s28 + $0x70] sm:$0xff]  ;;  %v1086_v19 = vld [vmem:[%s217_s28 + $0x78] sm:$0xff]  ;;  %v319_v36 = vadd.s32 4294967288, %v314_v34  ;;  %v326_v38 = vadd.s32 4294967280, %v314_v34  ;;  %s1131_s29 = scalar_lea.vmem [#allocation5], %s693_s25 }
  0x3d   : > { %v268_v17 = vadd.f32 %v1078_v15, %v1076_v14  ;;  %v1088_v20 = vld [vmem:[%s217_s28 + $0x30] sm:$0xff]  ;;  %v1090_v21 = vld [vmem:[%s217_s28 + $0x38] sm:$0xff]  ;;  %v283_v22 = vadd.f32 %v1086_v19, %v1084_v18  ;;  %v294_v24 = vld [vmem:[%s1213_s1] sm:$0xff]  ;;  %v333_v43 = vadd.s32 4294967272, %v314_v34  ;;  %v317_v47 = vsub.s32 %v314_v34, %v1108_v39  ;;  %s710_s25 = sshll.u32 %s955_s22, 11  ;;  %s612_s12 = sshll.u32 %s1131_s29, 4  ;;  %s1164_s12 = int_to_ptr.vmem [resolvable:$true] %s612_s12 }
  0x3e   : > { %v271_v23 = vadd.f32 %v1090_v21, %v1088_v20  ;;  %v295_v25 = vld [vmem:[%s1213_s1 + $0x8] sm:$0xff]  ;;  %v296_v28 = vld [vmem:[%s1213_s1 + $0x10] sm:$0xff]  ;;  %v297_v29 = vld [vmem:[%s1213_s1 + $0x18] sm:$0xff]  ;;  %v322_v41 = vsub.s32 %v319_v36, %v1108_v39  ;;  %v329_v45 = vsub.s32 %v326_v38, %v1108_v39  ;;  %v529_v38 = vsub.s32 0, %v1108_v39  ;;  %s1162_s16 = scalar_lea.hbm %s1217_s5, %s710_s25  ;;  %s598_s22 = scalar_lea.sflag [#allocation4], %s1038_s23 }
  0x3f   : > { %278 = vadd.xlane.f32.xlu1 %v277_v10  ;;  %v735_v26 = vpack.c.bf16 %v295_v25, %v294_v24  ;;  %v738_v30 = vpack.c.bf16 %v297_v29, %v296_v28  ;;  %v336_v54 = vsub.s32 %v333_v43, %v1108_v39  ;;  %v435_v25 = vld [vmem:[%s1215_s3] sm:$0x3]  ;;  %s827_s8 = scalar_lea.vmem %s1164_s12, 2048  ;;  %p1224_p11 = scmp.ne.s32.totalorder %s1221_s30, 0 }
  0x40   : > { %266 = vadd.xlane.f32.xlu0 %v265_v11  ;;  %730 = vmatpush3.msk.msra.mxu1 %vm447_vm6, %v435_v25  ;;  %v697_v31 = vld [vmem:[%s1216_s4] ss:$0 sm:$0xff]  ;;  %p828_p6 = scmp.ne.s32.totalorder %s1164_s12, %s827_s8  ;;  %s901_s7 = smov [#allocation5]  }
  0x41   : > { %736 = vmatpush3.bf16.msra.mxu0 %v735_v26  ;;  %v695_v26 = vld [vmem:[%s1214_s2] ss:$0 sm:$0xff]  ;;  %s831_s9 = sshll.u32 %s901_s7, 4  ;;  %s832_s9 = int_to_ptr.vmem [resolvable:$false] %s831_s9 }
  0x42   : > { %737 = vmatprep.subr.bf16.mxu0 %v898_v27  ;;  %p829_p12 = pnand %p828_p6, %p1224_p11  ;;  %s833_s10 = scalar_lea.vmem %s832_s9, 4096 }
  0x43   : > { %281 = vadd.xlane.f32.xlu1 %v280_v16  ;;  %p834_p8 = scmp.lt.s32.totalorder %s1164_s12, %s832_s9  ;;  %p835_p10 = scmp.lt.s32.totalorder %s833_s10, %s827_s8 }
  0x44   : > { %269 = vadd.xlane.f32.xlu0 %v268_v17  ;;  %p830_p13 = pneg %p829_p12 }
  0x45   : > { %739 = vmatpush3.bf16.msra.mxu0 %v738_v30  ;;  %p836_p0 = por %p835_p10, %p834_p8 }
  0x47   : > { %284 = vadd.xlane.f32.xlu1 %v283_v22  ;;  %p837_p2 = pnand %p836_p0, %p830_p13 }
  0x48   : > { %272 = vadd.xlane.f32.xlu0 %v271_v23 }
  0xc8   : > { %v276_v33 = vpop.xlane.xlu1 %275 }
  0xc9   : > { %v264_v35 = vpop.xlane.xlu0 %263  ;;  %v290_v48 = vmul.f32 0.00390625, %v276_v33 }
  0xca   : > { %v286_v51 = vmul.f32 0.00390625, %v264_v35 }
  0xcb   : > { %v343_v58 = vrot.slane %v290_v48, %v317_v47 }
  0xcc   : > { %v279_v37 = vpop.xlane.xlu1 %278  ;;  %v318_v62 = vrot.slane %v286_v51, %v317_v47 }
  0xcd   : > { %v267_v40 = vpop.xlane.xlu0 %266  ;;  %v291_v42 = vmul.f32 0.00390625, %v279_v37 }
  0xce   : > { %v287_v44 = vmul.f32 0.00390625, %v267_v40 }
  0xcf   : > { %v347_v53 = vrot.slane %v291_v42, %v322_v41  ;;  %v548_v42 = vsub.s32 1, %v1108_v39 }
  0xd0   : > { %v282_v46 = vpop.xlane.xlu1 %281  ;;  %v323_v55 = vrot.slane %v287_v44, %v322_v41 }
  0xd1   : > { %v292_v49 = vmul.f32 0.00390625, %v282_v46  ;;  %v270_v50 = vpop.xlane.xlu0 %269  ;;  %v348_v3 = vsel %vm324_vm1, %v347_v53, %v343_v58 }
  0xd2   : > { %v288_v52 = vmul.f32 0.00390625, %v270_v50  ;;  %v325_v10 = vsel %vm324_vm1, %v323_v55, %v318_v62 }
  0xd3   : > { %v352_v56 = vrot.slane %v292_v49, %v329_v45 }
  0xd4   : > { %v285_v57 = vpop.xlane.xlu1 %284  ;;  %v330_v59 = vrot.slane %v288_v52, %v329_v45 }
  0xd5   : > { %v293_v60 = vmul.f32 0.00390625, %v285_v57  ;;  %v273_v61 = vpop.xlane.xlu0 %272  ;;  %v353_v11 = vsel %vm331_vm2, %v352_v56, %v348_v3 }
  0xd6   : > { %v289_v63 = vmul.f32 0.00390625, %v273_v61  ;;  %v332_v17 = vsel %vm331_vm2, %v330_v59, %v325_v10 }
  0xd7   : > { %v357_v7 = vrot.slane %v293_v60, %v336_v54 }
  0xd8   : > { %v337_v16 = vrot.slane %v289_v63, %v336_v54 }
  0xd9   : > { %v358_v22 = vsel %vm338_vm3, %v357_v7, %v353_v11 }
  0xda   : > { %v339_v23 = vsel %vm338_vm3, %v337_v16, %v332_v17 }
  0xdb   : > { %v360_v24 = vsel %vm359_vm4, %v358_v22, %v339_v23 }
  0xdc   : > { %727 = vmatmul.mubr.msk.f32.vlgmr.msra.gmra.mrb[0].mxu0 %vm361_vm5, %v360_v24 }
 0x1af   : > { %v430_v27 = vpop.f32.mrb[0].mxu0 }
 0x1b0   : > { %v431_v28 = vadd.f32 %v695_v26, %v430_v27  ;;  %v728_v29 = vpop.f32.mrb[1].mxu0 }
 0x1b2   : > { %v434_v30 = vmax.f32 %v431_v28, 0.0 }
 0x1b4   : > { %732 = vmatmul.mubr.msk.f32.vlgmr.msra.gmra.mrb[0].mxu1 %vm443_vm7, %v434_v30 }
 0x287   : > { %v517_v32 = vpop.f32.mrb[0].mxu1 }
 0x288   : > { %v518_v33 = vadd.f32 %v697_v31, %v517_v32  ;;  %v733_v34 = vpop.f32.mrb[1].mxu1 }
 0x28a   : > { %v700_v35 = vmul.f32 -1.442695, %v518_v33 }
 0x28c   : > { %793 = vpow2.f32 %v700_v35 }
 0x296   : > { %v794_v36 = vpop.eup %793 }
 0x297   : > { %v524_v37 = vadd.f32 1.0, %v794_v36 }
 0x299   : > { %795 = vrcp.f32 %v524_v37 }
 0x2a3   : > { %v796_v40 = vpop.eup %795 }
 0x2a4   : > { %v530_v41 = vrot.slane %v796_v40, %v529_v38  ;;  %v549_v43 = vrot.slane %v796_v40, %v548_v42 }
 0x2a6   : > { %536 = vbcast.lane.b32.xlu1 %v530_v41, 264  ;;  %532 = vbcast.lane.b32.xlu0 %v530_v41, 256 }
 0x2aa   : > { %540 = vbcast.lane.b32.xlu1 %v530_v41, 272  ;;  %551 = vbcast.lane.b32.xlu0 %v549_v43, 256 }
 0x2ae   : > { %544 = vbcast.lane.b32.xlu1 %v530_v41, 280  ;;  %559 = vbcast.lane.b32.xlu0 %v549_v43, 272 }
 0x2b2   : > { %555 = vbcast.lane.b32.xlu1 %v549_v43, 264 }
 0x2b6   : > { %563 = vbcast.lane.b32.xlu1 %v549_v43, 280 }
 0x318   : > { %v537_v44 = vpop.permute.xlu1 %536  ;;  %v533_v45 = vpop.permute.xlu0 %532 }
 0x319   : > { %v567_v46 = vmul.f32 %v537_v44, %v1064_v8  ;;  %v568_v47 = vmul.f32 %v537_v44, %v1066_v9  ;;  %v565_v48 = vmul.f32 %v533_v45, %v1052_v2  ;;  %v566_v39 = vmul.f32 %v533_v45, %v1056_v4 }
 0x31b   : > { %583 = vst [vmem:[%s1131_s29 + $0x10] sm:$0xff] %v567_v46  ;;  %584 = vst [vmem:[%s1131_s29 + $0x18] sm:$0xff] %v568_v47 }
 0x31c   : > { %581 = vst [vmem:[%s1131_s29] sm:$0xff] %v565_v48  ;;  %582 = vst [vmem:[%s1131_s29 + $0x8] sm:$0xff] %v566_v39  ;;  %v541_v8 = vpop.permute.xlu1 %540  ;;  %v552_v2 = vpop.permute.xlu0 %551 }
 0x31d   : > { %v569_v4 = vmul.f32 %v541_v8, %v1076_v14  ;;  %v570_v9 = vmul.f32 %v541_v8, %v1078_v15  ;;  %v573_v49 = vmul.f32 %v552_v2, %v1048_v0  ;;  %v574_v50 = vmul.f32 %v552_v2, %v1050_v1 }
 0x31f   : > { %585 = vst [vmem:[%s1131_s29 + $0x20] sm:$0xff] %v569_v4  ;;  %586 = vst [vmem:[%s1131_s29 + $0x28] sm:$0xff] %v570_v9 }
 0x320   : > { %589 = vst [vmem:[%s1131_s29 + $0x40] sm:$0xff] %v573_v49  ;;  %590 = vst [vmem:[%s1131_s29 + $0x48] sm:$0xff] %v574_v50  ;;  %v545_v51 = vpop.permute.xlu1 %544  ;;  %v560_v52 = vpop.permute.xlu0 %559 }
 0x321   : > { %v571_v14 = vmul.f32 %v545_v51, %v1088_v20  ;;  %v572_v53 = vmul.f32 %v545_v51, %v1090_v21  ;;  %v577_v15 = vmul.f32 %v560_v52, %v1072_v12  ;;  %v578_v0 = vmul.f32 %v560_v52, %v1074_v13 }
 0x323   : > { %587 = vst [vmem:[%s1131_s29 + $0x30] sm:$0xff] %v571_v14  ;;  %588 = vst [vmem:[%s1131_s29 + $0x38] sm:$0xff] %v572_v53 }
 0x324   : > { %593 = vst [vmem:[%s1131_s29 + $0x60] sm:$0xff] %v577_v15  ;;  %594 = vst [vmem:[%s1131_s29 + $0x68] sm:$0xff] %v578_v0  ;;  %v556_v1 = vpop.permute.xlu1 %555 }
 0x325   : > { %v575_v54 = vmul.f32 %v556_v1, %v1058_v5  ;;  %v576_v55 = vmul.f32 %v556_v1, %v1060_v6 }
 0x327   : > { %591 = vst [vmem:[%s1131_s29 + $0x50] sm:$0xff] %v575_v54  ;;  %592 = vst [vmem:[%s1131_s29 + $0x58] sm:$0xff] %v576_v55 }
 0x328   : > { %v564_v12 = vpop.permute.xlu1 %563 }
 0x329   : > { %v579_v5 = vmul.f32 %v564_v12, %v1084_v18  ;;  %v580_v13 = vmul.f32 %v564_v12, %v1086_v19 }
 0x32b   : > { %595 = vst [vmem:[%s1131_s29 + $0x70] sm:$0xff] %v579_v5  ;;  %596 = vst [vmem:[%s1131_s29 + $0x78] sm:$0xff] %v580_v13 }
 0x32c   : > { %840 = shalt.err (!%p837_p2)
}
 0x32d   : > { %s841_s11 = scalar_lea.hbm %s1162_s16, 2048  ;;  %s845_s26 = scalar_lea.hbm %s1217_s5, 4096 }
 0x32e   : > { %p842_p4 = scmp.ne.s32.totalorder %s1162_s16, %s841_s11  ;;  %p846_p9 = scmp.lt.u32.totalorder %s1162_s16, %s1217_s5 }
 0x32f   : > { %p847_p1 = scmp.lt.u32.totalorder %s845_s26, %s841_s11  ;;  %p849_p6 = scmp.lt.u32.totalorder %s841_s11, %s1162_s16 }
 0x330   : > { %p843_p5 = pnand %p842_p4, %p1224_p11 }
 0x331   : > { %p848_p3 = por %p847_p1, %p846_p9 }
 0x332   : > { %p844_p7 = pneg %p843_p5 }
 0x333   : > { %p850_p12 = por %p849_p6, %p848_p3 }
 0x335   : > { %p851_p13 = pnand %p850_p12, %p844_p7 }
 0x337   : > { %854 = shalt.err (!%p851_p13)
}
 0x338   : > { %s902_s25 = smov 256   ;;  %s903_s14 = smov 16  }
 0x339   : > { %742 = dma.vmem_to_hbm [thread:$0]  (%p1224_p11), %s1164_s12, 2048, %s1162_s16, %s598_s22, %s902_s25, %s902_s25, %s903_s14  }
 0x33a PF: > { %s627_s15 = sand.u32 1, %s881_s18   ;;  %p1225_p8 = scmp.ne.s32.totalorder %s1222_s6, 0 }
 0x33b   : > { %p1226_p10 = scmp.ge.s32.totalorder %s893_s21, 2  ;;  %s628_s8 = scalar_lea.sflag [#allocation4], %s627_s15 }
 0x33d   : > { %p749_p0 = pnand %p1226_p10, %p1225_p8 }
 0x33f   : > { %876 = dma.done.wait (!%p749_p0), %s628_s8, 2048  }
 0x340   : > { %878 = vsyncadd (!%p749_p0), %s628_s8, 4294965248  ;;  %p18_p2 = scmp.ge.s32.totalorder %s959_s24, 4   ;;  %s1227_s18 = smov %s885_s19 }
 0x341   : > { %s1228_s19 = smov %s889_s20  ;;  %s1229_s20 = smov %s971_s27 }
 0x342   : > { %s1230_s21 = smov %s959_s24  ;;  %20 = sbr.rel (!%p18_p2) target bundleno = 5 (0x5), region = 85 }
 0x349   :  { %633 = vsyncpa [#allocation3], 1 }
 0x34a   :  { %635 = vsyncpa [#allocation3 + $0x1], 1 }
 0x34b   :  { %636 = vsyncpa [#allocation4], 1 }
 0x34c   :  { %638 = vsyncpa [#allocation4 + $0x1], 1 }

</bundles_post_ra>
